<compile_context>
chip_gen: v5e
topology: v5e:2x2
jax: 0.10.0
libtpu: 0.0.40
codegen_flags: <defaults>
</compile_context>

<pallas_src>
import functools

import jax
import jax.numpy as jnp
from jax.experimental import pallas as pl
from jax.experimental.pallas import tpu as pltpu


def dense_kernel(x_ref, w_ref, b_ref, o_ref, acc_ref):
    k = pl.program_id(2)

    @pl.when(k == 0)
    def _():
        acc_ref[...] = jnp.zeros_like(acc_ref)

    # Pure MXU accumulate on the inner (K) loop; f32 accumulation.
    acc_ref[...] += jnp.dot(
        x_ref[...], w_ref[...], preferred_element_type=jnp.float32
    )

    @pl.when(k == pl.num_programs(2) - 1)
    def _():
        # Bias add only once, off the critical inner loop; then cast + store.
        out = acc_ref[...] + b_ref[...].astype(jnp.float32)
        o_ref[...] = out.astype(o_ref.dtype)


def _pick_tile(dim, pref, align):
    """Largest tile <= pref that is a multiple of `align` and divides `dim`,
    falling back to the full dim (always legal: block == full array dim)."""
    if dim <= pref:
        return dim
    cand = (pref // align) * align
    while cand >= align:
        if dim % cand == 0:
            return cand
        cand -= align
    return dim


@functools.partial(jax.jit, static_argnames=("tm", "tn", "tk", "compute_dtype"))
def dense_layer(x, w_t, b, *, tm=256, tn=256, tk=512, compute_dtype=None):
    """y = x @ w_t + b  (equivalent to torch.nn.Linear(input_dim, output_dim)).

    x:   (M, K)   activations
    w_t: (K, N)   weight, already transposed from PyTorch's (N, K)
    b:   (N,)     bias
    compute_dtype: e.g. jnp.bfloat16 on v6e/v7x for ~2x MXU throughput and
                   half the weight bandwidth (accumulation stays f32).
    """
    M, K = x.shape
    Kw, N = w_t.shape
    assert K == Kw and b.shape == (N,)

    out_dtype = x.dtype
    if compute_dtype is not None:
        x = x.astype(compute_dtype)
        w_t = w_t.astype(compute_dtype)

    b2 = b.reshape(1, N)

    # Clamp / align tiles to the problem size (block dims must be multiples of
    # (8, 128) or equal to the full array dim).
    tm = _pick_tile(M, tm, 8)
    tn = _pick_tile(N, tn, 128)
    tk = _pick_tile(K, tk, 128)  # tk must divide K exactly (reduction axis)

    grid = (pl.cdiv(M, tm), pl.cdiv(N, tn), pl.cdiv(K, tk))

    return pl.pallas_call(
        dense_kernel,
        out_shape=jax.ShapeDtypeStruct((M, N), out_dtype),
        grid_spec=pltpu.PrefetchScalarGridSpec(
            num_scalar_prefetch=0,
            grid=grid,
            in_specs=[
                pl.BlockSpec((tm, tk), lambda i, j, k: (i, k)),  # x tile
                pl.BlockSpec((tk, tn), lambda i, j, k: (k, j)),  # weight tile
                pl.BlockSpec((1, tn), lambda i, j, k: (0, j)),   # bias tile
            ],
            out_specs=pl.BlockSpec((tm, tn), lambda i, j, k: (i, j)),
            scratch_shapes=[pltpu.VMEM((tm, tn), jnp.float32)],
        ),
        compiler_params=pltpu.CompilerParams(
            dimension_semantics=("parallel", "parallel", "arbitrary"),
            # ~3 MiB of tiles at (256,256,512) f32 — comfortably inside the
            # scoped budget on every generation (incl. v7x's 64 MiB VMEM).
            vmem_limit_bytes=32 * 1024 * 1024,
        ),
    )(x, w_t, b2)


if __name__ == "__main__":
    # Small but lane-friendly shapes for the DenseLayer forward.
    batch, input_dim, output_dim = 64, 256, 128

    key = jax.random.PRNGKey(0)
    kx, kw, kb = jax.random.split(key, 3)

    # Mimic nn.Linear's uniform(-1/sqrt(in), 1/sqrt(in)) init, deterministically.
    bound = 1.0 / (input_dim ** 0.5)
    w = jax.random.uniform(kw, (output_dim, input_dim), jnp.float32, -bound, bound)
    b = jax.random.uniform(kb, (output_dim,), jnp.float32, -bound, bound)
    x = jax.random.normal(kx, (batch, input_dim), jnp.float32)

    # Kernel expects the weight transposed to (input_dim, output_dim).
    y = dense_layer(x, w.T, b)  # f32 path so the strict tolerance check holds
    jax.block_until_ready(y)

    # Reference: PyTorch semantics y = x @ W^T + b.
    y_ref = x @ w.T + b
    assert y.shape == (batch, output_dim)
    assert jnp.allclose(y, y_ref, atol=1e-5, rtol=1e-5), "mismatch vs reference"

    # Optional bf16 compute path (what you'd run on v6e/v7x for real sizes).
    y_bf16 = dense_layer(x, w.T, b, compute_dtype=jnp.bfloat16)
    jax.block_until_ready(y_bf16)
    assert jnp.allclose(y_bf16, y_ref, atol=3e-2, rtol=3e-2), "bf16 path mismatch"

    print("KERNEL_OK")
</pallas_src>

<mosaic_0001>
module attributes {stable_mosaic.version = 11 : i64} {
  func.func @dense_kernel(%arg0: i32, %arg1: i32, %arg2: i32, %arg3: memref<64x256xf32, #tpu.memory_space<vmem>>, %arg4: memref<256x128xf32, #tpu.memory_space<vmem>>, %arg5: memref<1x128xf32, #tpu.memory_space<vmem>>, %arg6: memref<64x128xf32, #tpu.memory_space<vmem>>, %arg7: memref<64x128xf32, #tpu.memory_space<vmem>>) attributes {dimension_semantics = [#tpu.dimension_semantics<parallel>, #tpu.dimension_semantics<parallel>, #tpu.dimension_semantics<arbitrary>], iteration_bounds = array<i64: 1, 1, 1>, scalar_prefetch = 0 : i64, scratch_operands = 1 : i64, tpu.core_type = #tpu.core_type<tc>, window_params = [{transform_indices = @transform_0, window_bounds = array<i64: 64, 256>}, {transform_indices = @transform_1, window_bounds = array<i64: 256, 128>}, {transform_indices = @transform_2, window_bounds = array<i64: 1, 128>}, {transform_indices = @transform_3, window_bounds = array<i64: 64, 128>}]} {
    %c0_i32 = arith.constant 0 : i32
    %0 = arith.cmpi eq, %arg2, %c0_i32 : i32
    %1 = arith.extui %0 : i1 to i32
    %c0_i32_0 = arith.constant 0 : i32
    %2 = arith.cmpi ne, %1, %c0_i32_0 : i32
    scf.if %2 {
      %cst_10 = arith.constant 0.000000e+00 : f32
      %12 = vector.broadcast %cst_10 : f32 to vector<64x128xf32>
      %c0_11 = arith.constant 0 : index
      %c0_12 = arith.constant 0 : index
      %13 = vector.load %arg7[%c0_11, %c0_12] : memref<64x128xf32, #tpu.memory_space<vmem>>, vector<64x128xf32>
      tpu.vector_store %arg7[%c0_11, %c0_12], %12 {strides = array<i32>} : memref<64x128xf32, #tpu.memory_space<vmem>>, vector<64x128xf32>,
    } else {
    }
    %c0 = arith.constant 0 : index
    %c0_1 = arith.constant 0 : index
    %3 = vector.load %arg7[%c0, %c0_1] : memref<64x128xf32, #tpu.memory_space<vmem>>, vector<64x128xf32>
    %c0_2 = arith.constant 0 : index
    %c0_3 = arith.constant 0 : index
    %4 = vector.load %arg3[%c0_2, %c0_3] : memref<64x256xf32, #tpu.memory_space<vmem>>, vector<64x256xf32>
    %c0_4 = arith.constant 0 : index
    %c0_5 = arith.constant 0 : index
    %5 = vector.load %arg4[%c0_4, %c0_5] : memref<256x128xf32, #tpu.memory_space<vmem>>, vector<256x128xf32>
    %cst = arith.constant dense<0.000000e+00> : vector<64x128xf32>
    %6 = tpu.matmul %4, %5, %cst {dimension_numbers = #tpu.dot_dimension_numbers<[1], [0], [0], [1], [0, 0, 1, 1], [], []>} : vector<64x256xf32>, vector<256x128xf32>, vector<64x128xf32> -> vector<64x128xf32>
    %7 = arith.addf %3, %6 : vector<64x128xf32>
    %c0_6 = arith.constant 0 : index
    %c0_7 = arith.constant 0 : index
    %8 = vector.load %arg7[%c0_6, %c0_7] : memref<64x128xf32, #tpu.memory_space<vmem>>, vector<64x128xf32>
    tpu.vector_store %arg7[%c0_6, %c0_7], %7 {strides = array<i32>} : memref<64x128xf32, #tpu.memory_space<vmem>>, vector<64x128xf32>,
    %c0_i32_8 = arith.constant 0 : i32
    %9 = arith.cmpi eq, %arg2, %c0_i32_8 : i32
    %10 = arith.extui %9 : i1 to i32
    %c0_i32_9 = arith.constant 0 : i32
    %11 = arith.cmpi ne, %10, %c0_i32_9 : i32
    scf.if %11 {
      %c0_10 = arith.constant 0 : index
      %c0_11 = arith.constant 0 : index
      %12 = vector.load %arg7[%c0_10, %c0_11] : memref<64x128xf32, #tpu.memory_space<vmem>>, vector<64x128xf32>
      %c0_12 = arith.constant 0 : index
      %c0_13 = arith.constant 0 : index
      %13 = vector.load %arg5[%c0_12, %c0_13] : memref<1x128xf32, #tpu.memory_space<vmem>>, vector<1x128xf32>
      %14 = vector.broadcast %13 : vector<1x128xf32> to vector<64x128xf32>
      %15 = arith.addf %12, %14 : vector<64x128xf32>
      %c0_14 = arith.constant 0 : index
      %c0_15 = arith.constant 0 : index
      %16 = vector.load %arg6[%c0_14, %c0_15] : memref<64x128xf32, #tpu.memory_space<vmem>>, vector<64x128xf32>
      tpu.vector_store %arg6[%c0_14, %c0_15], %15 {strides = array<i32>} : memref<64x128xf32, #tpu.memory_space<vmem>>, vector<64x128xf32>,
    } else {
    }
    return
  }
  func.func @transform_0(%arg0: i32, %arg1: i32, %arg2: i32) -> (i32, i32) {
    %c0_i32 = arith.constant 0 : i32
    return %arg0, %arg2 : i32, i32
  }
  func.func @transform_1(%arg0: i32, %arg1: i32, %arg2: i32) -> (i32, i32) {
    %c0_i32 = arith.constant 0 : i32
    return %arg2, %arg1 : i32, i32
  }
  func.func @transform_2(%arg0: i32, %arg1: i32, %arg2: i32) -> (i32, i32) {
    %c0_i32 = arith.constant 0 : i32
    %c0_i32_0 = arith.constant 0 : i32
    return %c0_i32, %arg1 : i32, i32
  }
  func.func @transform_3(%arg0: i32, %arg1: i32, %arg2: i32) -> (i32, i32) {
    %c0_i32 = arith.constant 0 : i32
    return %arg0, %arg1 : i32, i32
  }
}

</mosaic_0001>

<bundles_post_ra>
// kernel: dense_layer.1
= control target key start
LH: loop header
LB: loop body
LE: loop exit
PB: predicated region body
PF: predicated region fallthrough
CT: control target
= control target key end

     0   :  { %8 = vsyncpa [#allocation4], 0  ;;  %s427_s0 = inlined_call_operand.hbm [shape: f32[64,256], index: 0, kind: input, shape index: {}]   ;;  %s428_s1 = inlined_call_operand.hbm [shape: f32[256,128], index: 1, kind: input, shape index: {}]   ;;  %s429_s2 = inlined_call_operand.vmem [shape: f32[1,128], index: 2, kind: input, shape index: {}]   ;;  %s430_s3 = inlined_call_operand.hbm [shape: f32[64,128], index: 3, kind: output, shape index: {}]  }
   0x1   :  { %9 = vsyncpa [#allocation7], 0 }
   0x2   :  { %10 = vsyncpa [#allocation5], 0  ;;  %s15_s14 = sshll.u32 %s427_s0, 4  ;;  %s382_s15 = smov [#allocation3]   ;;  %s16_s14 = int_to_ptr.hbm [resolvable:$true] %s15_s14 }
   0x3   :  { %s17_s16 = sshll.u32 %s382_s15, 4  ;;  %s28_s19 = sshll.u32 %s428_s1, 4  ;;  %s18_s16 = int_to_ptr.vmem [resolvable:$true] %s17_s16  ;;  %s29_s19 = int_to_ptr.hbm [resolvable:$true] %s28_s19 }
   0x4   :  { %s383_s20 = smov 256   ;;  %s384_s21 = smov 16  }
   0x5   :  { %23 = dma.hbm_to_vmem [thread:$0]  %s16_s14, 2048, %s18_s16, [#allocation4], %s383_s20, %s383_s20, %s384_s21  }
   0x6   :  { %s385_s22 = smov [#allocation6]   ;;  %s386_s24 = smov 128  }
   0x7   :  { %s30_s23 = sshll.u32 %s385_s22, 4  ;;  %s387_s25 = smov 8   ;;  %s31_s23 = int_to_ptr.vmem [resolvable:$true] %s30_s23 }
   0x8   :  { %36 = dma.hbm_to_vmem [thread:$0]  %s29_s19, 4096, %s31_s23, [#allocation7], %s386_s24, %s386_s24, %s387_s25  }
   0x9   :  { %376 = dma.done.wait [#allocation4], 2048  }
   0xa   :  { %377 = vsyncadd [#allocation4], 4294965248 }
   0xb   :  { %378 = dma.done.wait [#allocation7], 4096  }
   0xc   :  { %379 = vsyncadd [#allocation7], 4294963200  ;;  %v98_v0 = vld [vmem:[#allocation6 + $0x78] sm:$0xff]  ;;  %v97_v2 = vld [vmem:[#allocation6 + $0x70] sm:$0xff]  ;;  %s250_s29 = sshll.u32 %s430_s3, 4  ;;  %s251_s29 = int_to_ptr.hbm [resolvable:$true] %s250_s29 }
   0xd   :  { %v114_v1 = vld [vmem:[#allocation6 + $0xf8] sm:$0xff]  ;;  %264 = vmatpush.msra.mxu2 %v98_v0  ;;  %v113_v3 = vld [vmem:[#allocation6 + $0xf0] sm:$0xff]  ;;  %v96_v4 = vld [vmem:[#allocation6 + $0x68] sm:$0xff]  ;;  %115 = vmatpush.msra.mxu0 %v98_v0 }
   0xe   :  { %280 = vmatpush.msra.mxu3 %v114_v1  ;;  %v112_v5 = vld [vmem:[#allocation6 + $0xe8] sm:$0xff]  ;;  %156 = vmatpush.msra.mxu1 %v114_v1  ;;  %v95_v6 = vld [vmem:[#allocation6 + $0x60] sm:$0xff]  ;;  %v94_v8 = vld [vmem:[#allocation6 + $0x58] sm:$0xff] }
   0xf   :  { %265 = vmatpush.msra.mxu2 %v97_v2  ;;  %v111_v7 = vld [vmem:[#allocation6 + $0xe0] sm:$0xff]  ;;  %116 = vmatpush.msra.mxu0 %v97_v2  ;;  %v110_v9 = vld [vmem:[#allocation6 + $0xd8] sm:$0xff]  ;;  %v93_v10 = vld [vmem:[#allocation6 + $0x50] sm:$0xff] }
  0x10   :  { %281 = vmatpush.msra.mxu3 %v113_v3  ;;  %157 = vmatpush.msra.mxu1 %v113_v3  ;;  %v109_v11 = vld [vmem:[#allocation6 + $0xd0] sm:$0xff]  ;;  %v92_v12 = vld [vmem:[#allocation6 + $0x48] sm:$0xff]  ;;  %v91_v14 = vld [vmem:[#allocation6 + $0x40] sm:$0xff] }
  0x11   :  { %266 = vmatpush.msra.mxu2 %v96_v4  ;;  %117 = vmatpush.msra.mxu0 %v96_v4  ;;  %v108_v13 = vld [vmem:[#allocation6 + $0xc8] sm:$0xff]  ;;  %v107_v15 = vld [vmem:[#allocation6 + $0xc0] sm:$0xff]  ;;  %v90_v16 = vld [vmem:[#allocation6 + $0x38] sm:$0xff] }
  0x12   :  { %282 = vmatpush.msra.mxu3 %v112_v5  ;;  %158 = vmatpush.msra.mxu1 %v112_v5  ;;  %v106_v17 = vld [vmem:[#allocation6 + $0xb8] sm:$0xff]  ;;  %v89_v18 = vld [vmem:[#allocation6 + $0x30] sm:$0xff]  ;;  %v88_v20 = vld [vmem:[#allocation6 + $0x28] sm:$0xff] }
  0x13   :  { %267 = vmatpush.msra.mxu2 %v95_v6  ;;  %118 = vmatpush.msra.mxu0 %v95_v6  ;;  %v105_v19 = vld [vmem:[#allocation6 + $0xb0] sm:$0xff]  ;;  %v104_v21 = vld [vmem:[#allocation6 + $0xa8] sm:$0xff]  ;;  %v87_v22 = vld [vmem:[#allocation6 + $0x20] sm:$0xff] }
  0x14   :  { %283 = vmatpush.msra.mxu3 %v111_v7  ;;  %159 = vmatpush.msra.mxu1 %v111_v7  ;;  %v103_v23 = vld [vmem:[#allocation6 + $0xa0] sm:$0xff]  ;;  %v86_v24 = vld [vmem:[#allocation6 + $0x18] sm:$0xff]  ;;  %v85_v26 = vld [vmem:[#allocation6 + $0x10] sm:$0xff] }
  0x15   :  { %268 = vmatpush.msra.mxu2 %v94_v8  ;;  %119 = vmatpush.msra.mxu0 %v94_v8  ;;  %v102_v25 = vld [vmem:[#allocation6 + $0x98] sm:$0xff]  ;;  %v101_v27 = vld [vmem:[#allocation6 + $0x90] sm:$0xff]  ;;  %v84_v28 = vld [vmem:[#allocation6 + $0x8] sm:$0xff] }
  0x16   :  { %284 = vmatpush.msra.mxu3 %v110_v9  ;;  %160 = vmatpush.msra.mxu1 %v110_v9  ;;  %v100_v29 = vld [vmem:[#allocation6 + $0x88] sm:$0xff]  ;;  %v83_v30 = vld [vmem:[#allocation6] sm:$0xff]  ;;  %v77_v36 = vld [vmem:[#allocation3 + $0x50] sm:$0xff] }
  0x17   :  { %269 = vmatpush.msra.mxu2 %v93_v10  ;;  %120 = vmatpush.msra.mxu0 %v93_v10  ;;  %v99_v31 = vld [vmem:[#allocation6 + $0x80] sm:$0xff]  ;;  %v76_v33 = vld [vmem:[#allocation3 + $0x48] sm:$0xff]  ;;  %v78_v37 = vld [vmem:[#allocation3 + $0x58] sm:$0xff] }
  0x18   :  { %285 = vmatpush.msra.mxu3 %v109_v11  ;;  %161 = vmatpush.msra.mxu1 %v109_v11  ;;  %v75_v32 = vld [vmem:[#allocation3 + $0x40] sm:$0xff]  ;;  %v68_v35 = vld [vmem:[#allocation3 + $0x8] sm:$0xff]  ;;  %v69_v38 = vld [vmem:[#allocation3 + $0x10] sm:$0xff] }
  0x19   :  { %270 = vmatpush.msra.mxu2 %v92_v12  ;;  %121 = vmatpush.msra.mxu0 %v92_v12  ;;  %v67_v34 = vld [vmem:[#allocation3] sm:$0xff]  ;;  %v70_v39 = vld [vmem:[#allocation3 + $0x18] sm:$0xff]  ;;  %v80_v41 = vld [vmem:[#allocation3 + $0x68] sm:$0xff] }
  0x1a   :  { %286 = vmatpush.msra.mxu3 %v108_v13  ;;  %162 = vmatpush.msra.mxu1 %v108_v13  ;;  %v79_v40 = vld [vmem:[#allocation3 + $0x60] sm:$0xff]  ;;  %v72_v43 = vld [vmem:[#allocation3 + $0x28] sm:$0xff]  ;;  %v81_v44 = vld [vmem:[#allocation3 + $0x70] sm:$0xff] }
  0x1b   :  { %271 = vmatpush.msra.mxu2 %v91_v14  ;;  %122 = vmatpush.msra.mxu0 %v91_v14  ;;  %v71_v42 = vld [vmem:[#allocation3 + $0x20] sm:$0xff]  ;;  %v82_v45 = vld [vmem:[#allocation3 + $0x78] sm:$0xff]  ;;  %v73_v46 = vld [vmem:[#allocation3 + $0x30] sm:$0xff] }
  0x1c   :  { %287 = vmatpush.msra.mxu3 %v107_v15  ;;  %163 = vmatpush.msra.mxu1 %v107_v15  ;;  %v74_v47 = vld [vmem:[#allocation3 + $0x38] sm:$0xff]  ;;  %v303_v48 = vld [vmem:[%s429_s2] ss:$0 sm:$0xff]  ;;  %s388_s2 = smov [#allocation8]  }
  0x1d   :  { %272 = vmatpush.msra.mxu2 %v90_v16  ;;  %123 = vmatpush.msra.mxu0 %v90_v16  ;;  %s248_s26 = sshll.u32 %s388_s2, 4  ;;  %s249_s26 = int_to_ptr.vmem [resolvable:$true] %s248_s26 }
  0x1e   :  { %288 = vmatpush.msra.mxu3 %v106_v17  ;;  %164 = vmatpush.msra.mxu1 %v106_v17 }
  0x1f   :  { %273 = vmatpush.msra.mxu2 %v89_v18  ;;  %124 = vmatpush.msra.mxu0 %v89_v18 }
  0x20   :  { %289 = vmatpush.msra.mxu3 %v105_v19  ;;  %165 = vmatpush.msra.mxu1 %v105_v19 }
  0x21   :  { %274 = vmatpush.msra.mxu2 %v88_v20  ;;  %125 = vmatpush.msra.mxu0 %v88_v20 }
  0x22   :  { %290 = vmatpush.msra.mxu3 %v104_v21  ;;  %166 = vmatpush.msra.mxu1 %v104_v21 }
  0x23   :  { %275 = vmatpush.msra.mxu2 %v87_v22  ;;  %126 = vmatpush.msra.mxu0 %v87_v22 }
  0x24   :  { %291 = vmatpush.msra.mxu3 %v103_v23  ;;  %167 = vmatpush.msra.mxu1 %v103_v23 }
  0x25   :  { %276 = vmatpush.msra.mxu2 %v86_v24  ;;  %127 = vmatpush.msra.mxu0 %v86_v24 }
  0x26   :  { %292 = vmatpush.msra.mxu3 %v102_v25  ;;  %168 = vmatpush.msra.mxu1 %v102_v25 }
  0x27   :  { %277 = vmatpush.msra.mxu2 %v85_v26  ;;  %128 = vmatpush.msra.mxu0 %v85_v26 }
  0x28   :  { %293 = vmatpush.msra.mxu3 %v101_v27  ;;  %169 = vmatpush.msra.mxu1 %v101_v27 }
  0x29   :  { %278 = vmatpush.msra.mxu2 %v84_v28  ;;  %129 = vmatpush.msra.mxu0 %v84_v28 }
  0x2a   :  { %294 = vmatpush.msra.mxu3 %v100_v29  ;;  %170 = vmatpush.msra.mxu1 %v100_v29 }
  0x2b   :  { %279 = vmatpush.msra.mxu2 %v83_v30  ;;  %130 = vmatpush.msra.mxu0 %v83_v30 }
  0x2c   :  { %295 = vmatpush.msra.mxu3 %v99_v31  ;;  %143 = vmatmul.f32.vlgmr.msra.gmra.mxu2 %v75_v32 }
  0x2d   :  { %184 = vmatmul.f32.vlgmr.msra.gmra.mxu3 %v76_v33  ;;  %171 = vmatpush.msra.mxu1 %v99_v31 }
  0x2e   :  { %131 = vmatmul.f32.vlgmr.msra.gmra.mxu0 %v67_v34  ;;  %172 = vmatmul.f32.vlgmr.msra.gmra.mxu1 %v68_v35 }
  0x34   :  { %146 = vmatmul.f32.gmra.mxu2 %v77_v36 }
  0x35   :  { %187 = vmatmul.f32.gmra.mxu3 %v78_v37 }
  0x36   :  { %134 = vmatmul.f32.gmra.mxu0 %v69_v38  ;;  %175 = vmatmul.f32.gmra.mxu1 %v70_v39 }
  0x3c   :  { %149 = vmatmul.f32.gmra.mxu2 %v79_v40 }
  0x3d   :  { %190 = vmatmul.f32.gmra.mxu3 %v80_v41 }
  0x3e   :  { %137 = vmatmul.f32.gmra.mxu0 %v71_v42  ;;  %178 = vmatmul.f32.gmra.mxu1 %v72_v43 }
  0x44   :  { %152 = vmatmul.f32.gmra.mxu2 %v81_v44 }
  0x45   :  { %193 = vmatmul.f32.gmra.mxu3 %v82_v45 }
  0x46   :  { %140 = vmatmul.f32.gmra.mxu0 %v73_v46  ;;  %181 = vmatmul.f32.gmra.mxu1 %v74_v47 }
  0xab   :  { %v132_v49 = vpop.f32.mrf.mxu0  ;;  %v173_v50 = vpop.f32.mrf.mxu1 }
  0xac   :  { %v174_v51 = vadd.f32 %v173_v50, %v132_v49 }
  0xae   :  { %v228_v52 = vadd.f32 %v303_v48, %v174_v51 }
  0xaf   :  { %v144_v53 = vpop.f32.mrf.mxu2 }
  0xb0   :  { %v185_v54 = vpop.f32.mrf.mxu3  ;;  %236 = vst [vmem:[#allocation8] sm:$0xff] %v228_v52 }
  0xb1   :  { %v186_v55 = vadd.f32 %v185_v54, %v144_v53 }
  0xb3   :  { %v232_v56 = vadd.f32 %v303_v48, %v186_v55  ;;  %v135_v57 = vpop.f32.mrf.mxu0  ;;  %v176_v58 = vpop.f32.mrf.mxu1 }
  0xb4   :  { %v177_v59 = vadd.f32 %v176_v58, %v135_v57 }
  0xb5   :  { %240 = vst [vmem:[#allocation8 + $0x20] sm:$0xff] %v232_v56 }
  0xb6   :  { %v229_v60 = vadd.f32 %v303_v48, %v177_v59 }
  0xb7   :  { %v147_v61 = vpop.f32.mrf.mxu2 }
  0xb8   :  { %v188_v62 = vpop.f32.mrf.mxu3  ;;  %237 = vst [vmem:[#allocation8 + $0x8] sm:$0xff] %v229_v60 }
  0xb9   :  { %v189_v63 = vadd.f32 %v188_v62, %v147_v61 }
  0xbb   :  { %v233_v0 = vadd.f32 %v303_v48, %v189_v63  ;;  %v138_v1 = vpop.f32.mrf.mxu0  ;;  %v179_v2 = vpop.f32.mrf.mxu1 }
  0xbc   :  { %v180_v3 = vadd.f32 %v179_v2, %v138_v1 }
  0xbd   :  { %241 = vst [vmem:[#allocation8 + $0x28] sm:$0xff] %v233_v0 }
  0xbe   :  { %v230_v4 = vadd.f32 %v303_v48, %v180_v3 }
  0xbf   :  { %v150_v5 = vpop.f32.mrf.mxu2 }
  0xc0   :  { %v191_v6 = vpop.f32.mrf.mxu3  ;;  %238 = vst [vmem:[#allocation8 + $0x10] sm:$0xff] %v230_v4 }
  0xc1   :  { %v192_v7 = vadd.f32 %v191_v6, %v150_v5 }
  0xc3   :  { %v234_v8 = vadd.f32 %v303_v48, %v192_v7  ;;  %v141_v9 = vpop.f32.mrf.mxu0  ;;  %v182_v10 = vpop.f32.mrf.mxu1 }
  0xc4   :  { %v183_v11 = vadd.f32 %v182_v10, %v141_v9 }
  0xc5   :  { %242 = vst [vmem:[#allocation8 + $0x30] sm:$0xff] %v234_v8 }
  0xc6   :  { %v231_v12 = vadd.f32 %v303_v48, %v183_v11 }
  0xc7   :  { %v153_v13 = vpop.f32.mrf.mxu2 }
  0xc8   :  { %v194_v14 = vpop.f32.mrf.mxu3  ;;  %239 = vst [vmem:[#allocation8 + $0x18] sm:$0xff] %v231_v12 }
  0xc9   :  { %v195_v15 = vadd.f32 %v194_v14, %v153_v13 }
  0xcb   :  { %v235_v16 = vadd.f32 %v303_v48, %v195_v15 }
  0xcd   :  { %243 = vst [vmem:[#allocation8 + $0x38] sm:$0xff] %v235_v16 }
  0xce   :  { %256 = dma.vmem_to_hbm [thread:$0]  %s249_s26, 1024, %s251_s29, [#allocation5], %s386_s24, %s386_s24, %s387_s25  }
  0xcf   :  { %380 = dma.done.wait [#allocation5], 1024  }
  0xd0   :  { %381 = vsyncadd [#allocation5], 4294966272 }
  0xd1   :  { %261 = vsyncpa [#allocation4], 1 }
  0xd2   :  { %262 = vsyncpa [#allocation7], 1 }
  0xd3   :  { %263 = vsyncpa [#allocation5], 1 }

</bundles_post_ra>
